<compile_context>
chip_gen: v7x
topology: tpu7x:2x2x1
jax: 0.10.0
libtpu: 0.0.40
codegen_flags: <defaults>
</compile_context>

<pallas_src>
import jax
import jax.numpy as jnp
from jax.experimental import pallas as pl
from jax.experimental.pallas import tpu as pltpu

LN_EPS = 1e-5  # PyTorch nn.LayerNorm default


def _patch_merging_kernel(x_ref, wge_ref, wgo_ref, s_ref, b_ref, o_ref):
    # x_ref : (1, TH, 2, W2, 2C)  raw 2x2-patch view of the input (no HBM concat)
    # wge   : (2C, 2C_out)  gamma-folded W^T rows for even image rows ([x0|x2])
    # wgo   : (2C, 2C_out)  gamma-folded W^T rows for odd image rows  ([x1|x3])
    # s_ref : (1, 2C_out) f32  column sums of gamma-folded W^T (= gamma @ W^T)
    # b_ref : (1, 2C_out) f32  beta @ W^T
    # o_ref : (1, TH, W2, 2C_out)
    _, th, _, w2, cc = x_ref.shape          # cc = 2*C (packed col-parity x C axis)
    four_c = 2 * cc
    rows = th * w2

    # Row-parity split is pure outer-dim addressing (no data shuffling).
    xe = x_ref[0, :, 0, :, :].reshape(rows, cc)   # even image rows: [x0 | x2]
    xo = x_ref[0, :, 1, :, :].reshape(rows, cc)   # odd  image rows: [x1 | x3]

    # LayerNorm statistics from raw sums, accumulated in f32 (var = E[x^2]-mean^2).
    xe32 = xe.astype(jnp.float32)
    xo32 = xo.astype(jnp.float32)
    total = (jnp.sum(xe32, axis=-1, keepdims=True)
             + jnp.sum(xo32, axis=-1, keepdims=True))
    sq = (jnp.sum(xe32 * xe32, axis=-1, keepdims=True)
          + jnp.sum(xo32 * xo32, axis=-1, keepdims=True))
    mean = total / four_c
    var = sq / four_c - mean * mean
    inv = jax.lax.rsqrt(var + LN_EPS)

    # Linear(4C -> 2C, bias=False) on RAW x with gamma pre-folded into the
    # weight rows. Single accumulation expression keeps the add in the MXU
    # result path (in-place MRB accumulate on v7x); f32 accumulation.
    acc = (jnp.dot(xe, wge_ref[...], preferred_element_type=jnp.float32)
           + jnp.dot(xo, wgo_ref[...], preferred_element_type=jnp.float32))

    # Post-matmul fixup on the (narrower) 2C_out axis, all in f32.
    out = acc * inv - (mean * inv) * s_ref[...] + b_ref[...]
    o_ref[0] = out.reshape(th, w2, out.shape[-1]).astype(o_ref.dtype)


def _fold_params(gamma, beta, reduction_weight, C, mm_dtype):
    """Fold LayerNorm affine into the reduction weight (kernel channel order).

    PyTorch channel order in the merged 4C vector is [x0 | x1 | x2 | x3]
    (x0: even row/even col, x1: odd/even, x2: even/odd, x3: odd/odd). The
    kernel consumes channels grouped by image-row parity:
        even rows -> [x0 | x2],  odd rows -> [x1 | x3].
    Tiny once-per-call XLA ops; in a real model precompute with the weights.
    """
    wT = reduction_weight.T.astype(jnp.float32)               # (4C, 2C_out)
    w_g = gamma.astype(jnp.float32)[:, None] * wT             # gamma folded into rows
    s = jnp.sum(w_g, axis=0, keepdims=True)                   # (1, 2C_out) = gamma @ W^T
    b_out = beta.astype(jnp.float32)[None, :] @ wT             # (1, 2C_out) = beta @ W^T
    w4 = w_g.reshape(4, C, -1)
    w_ge = jnp.concatenate([w4[0], w4[2]], axis=0).astype(mm_dtype)  # (2C, 2C_out)
    w_go = jnp.concatenate([w4[1], w4[3]], axis=0).astype(mm_dtype)  # (2C, 2C_out)
    return w_ge, w_go, s, b_out


def _vmem_budget():
    """(physical VMEM, scoped limit to request). v5e/v6e: 128->96 MiB; v7x: 64->48 MiB."""
    try:
        cap = int(pltpu.get_tpu_info().vmem_capacity_bytes)
    except Exception:
        cap = 64 << 20  # conservative fallback (v7x per-TensorCore VMEM)
    limit = min(int(cap * 3 // 4), 100 << 20)
    return cap, limit


def _pick_row_tile(H2, B, W2, bytes_per_h2row, sublane, block_budget, min_tiles=2):
    """Largest divisor TH of H2 such that the per-step footprint stays within the
    budget and the grid keeps >= min_tiles independent tiles (v7x megacore).
    Prefers TH with (TH*W2) % sublane == 0 so the in-kernel row collapse does
    not cross (8,128)/(16,128) tile boundaries (avoids a relayout copy)."""
    best = 1
    best_aligned = 0
    for cand in range(1, H2 + 1):
        if H2 % cand:
            continue
        if cand > 1 and cand * bytes_per_h2row > block_budget:
            continue
        if cand > 1 and B * (H2 // cand) < min_tiles:
            continue
        best = cand
        if (cand * W2) % sublane == 0:
            best_aligned = cand
    if best_aligned and 2 * best_aligned >= best:
        return best_aligned
    return best


def patch_merging_forward(x, gamma, beta, reduction_weight, input_resolution):
    """x: (B, H*W, C). reduction_weight: (2C, 4C) (PyTorch nn.Linear layout)."""
    H, W = input_resolution
    B, L, C = x.shape
    assert L == H * W
    assert H % 2 == 0 and W % 2 == 0, f"x size ({H}*{W}) are not even."

    H2, W2 = H // 2, W // 2
    out_c = 2 * C
    cc = 2 * C                                      # packed (col-parity, C) axis

    # Free, contiguous reshape: (B, H*W, C) -> (B, H/2, 2, W/2, 2*C).
    x6 = x.reshape(B, H2, 2, W2, cc)

    w_ge, w_go, s_vec, b_vec = _fold_params(gamma, beta, reduction_weight, C, x.dtype)

    in_itemsize = jnp.dtype(x.dtype).itemsize
    sublane = max(8, 32 // in_itemsize)             # 8 for f32, 16 for bf16

    _, vmem_limit = _vmem_budget()
    # Fixed residents: folded weights + fixup vectors (pipeline double-buffers
    # them even with a constant index_map -> count x2).
    fixed_bytes = 2 * cc * out_c * in_itemsize * 2 + 2 * out_c * 4 * 2
    block_budget = max(1 << 20, min(40 << 20, vmem_limit - fixed_bytes - (8 << 20)))

    # Per h2-row footprint: double-buffered in/out blocks + f32 stats/acc temps.
    bytes_per_h2row = W2 * (
        2 * cc * in_itemsize * 2          # input block (x2 buffers)
        + out_c * in_itemsize * 2         # output block (x2 buffers)
        + 2 * cc * 4 + out_c * 4 + 32)    # f32 intermediates (stats sums, acc)

    th = _pick_row_tile(H2, B, W2, bytes_per_h2row, sublane, block_budget)
    grid = (B, H2 // th)

    out4 = pl.pallas_call(
        _patch_merging_kernel,
        out_shape=jax.ShapeDtypeStruct((B, H2, W2, out_c), x.dtype),
        grid=grid,
        in_specs=[
            # Row-tile of merged tokens, strided-DMA'd straight from x.
            pl.BlockSpec((1, th, 2, W2, cc), lambda b, t: (b, t, 0, 0, 0)),
            # Folded params: constant index_map -> resident in VMEM across grid.
            pl.BlockSpec((cc, out_c), lambda b, t: (0, 0)),
            pl.BlockSpec((cc, out_c), lambda b, t: (0, 0)),
            pl.BlockSpec((1, out_c), lambda b, t: (0, 0)),
            pl.BlockSpec((1, out_c), lambda b, t: (0, 0)),
        ],
        # 4-D output block (last two dims = full extents) is always layout-legal
        # regardless of th; wrapper does a free collapse to (B, L/4, 2C).
        out_specs=pl.BlockSpec((1, th, W2, out_c), lambda b, t: (b, t, 0, 0)),
        compiler_params=pltpu.CompilerParams(
            dimension_semantics=("parallel", "parallel"),
            vmem_limit_bytes=int(vmem_limit),
        ),
    )(x6, w_ge, w_go, s_vec, b_vec)

    return out4.reshape(B, H2 * W2, out_c)


def _reference(x, gamma, beta, reduction_weight, input_resolution):
    """Pure-JAX reference matching the PyTorch forward."""
    H, W = input_resolution
    B, L, C = x.shape
    xv = x.reshape(B, H, W, C)
    x0 = xv[:, 0::2, 0::2, :]
    x1 = xv[:, 1::2, 0::2, :]
    x2 = xv[:, 0::2, 1::2, :]
    x3 = xv[:, 1::2, 1::2, :]
    xm = jnp.concatenate([x0, x1, x2, x3], axis=-1).reshape(B, -1, 4 * C)
    mean = jnp.mean(xm, axis=-1, keepdims=True)
    var = jnp.mean((xm - mean) ** 2, axis=-1, keepdims=True)
    xn = (xm - mean) / jnp.sqrt(var + LN_EPS) * gamma + beta
    return jnp.einsum("blk,ok->blo", xn, reduction_weight)


if __name__ == "__main__":
    key = jax.random.PRNGKey(0)
    B, H, W, C = 2, 16, 16, 4           # input_resolution=(16,16), dim=4
    k_x, k_w, k_g, k_b = jax.random.split(key, 4)

    x = jax.random.normal(k_x, (B, H * W, C), dtype=jnp.float32)

    # Deterministic parameter init (synthetic, not a checkpoint load).
    reduction_weight = 0.1 * jax.random.normal(k_w, (2 * C, 4 * C), dtype=jnp.float32)
    gamma = 1.0 + 0.05 * jax.random.normal(k_g, (4 * C,), dtype=jnp.float32)
    beta = 0.05 * jax.random.normal(k_b, (4 * C,), dtype=jnp.float32)

    out = patch_merging_forward(x, gamma, beta, reduction_weight, (H, W))
    out = jax.block_until_ready(out)

    ref = _reference(x, gamma, beta, reduction_weight, (H, W))
    assert out.shape == (B, (H // 2) * (W // 2), 2 * C), out.shape
    # Tolerance loosened marginally vs the un-folded version: var is computed
    # as E[x^2]-mean^2 and the affine is applied post-matmul (both in f32).
    assert jnp.allclose(out, ref, atol=1e-3, rtol=1e-3), float(jnp.max(jnp.abs(out - ref)))

    print("KERNEL_OK")
</pallas_src>

<mosaic_0001>
module attributes {stable_mosaic.version = 11 : i64} {
  func.func @_patch_merging_kernel(%arg0: i32, %arg1: i32, %arg2: memref<1x8x2x8x8xf32, #tpu.memory_space<vmem>>, %arg3: memref<8x8xf32, #tpu.memory_space<vmem>>, %arg4: memref<8x8xf32, #tpu.memory_space<vmem>>, %arg5: memref<1x8xf32, #tpu.memory_space<vmem>>, %arg6: memref<1x8xf32, #tpu.memory_space<vmem>>, %arg7: memref<1x8x8x8xf32, #tpu.memory_space<vmem>>) attributes {dimension_semantics = [#tpu.dimension_semantics<parallel>, #tpu.dimension_semantics<parallel>], iteration_bounds = array<i64: 2, 1>, scalar_prefetch = 0 : i64, scratch_operands = 0 : i64, tpu.core_type = #tpu.core_type<tc>, window_params = [{transform_indices = @transform_0, window_bounds = array<i64: 1, 8, 2, 8, 8>}, {pipeline_mode = #tpu.pipeline_mode<synchronous>, transform_indices = @transform_1, window_bounds = array<i64: 8, 8>}, {pipeline_mode = #tpu.pipeline_mode<synchronous>, transform_indices = @transform_2, window_bounds = array<i64: 8, 8>}, {pipeline_mode = #tpu.pipeline_mode<synchronous>, transform_indices = @transform_3, window_bounds = array<i64: 1, 8>}, {pipeline_mode = #tpu.pipeline_mode<synchronous>, transform_indices = @transform_4, window_bounds = array<i64: 1, 8>}, {transform_indices = @transform_5, window_bounds = array<i64: 1, 8, 8, 8>}]} {
    %c0 = arith.constant 0 : index
    %c0_0 = arith.constant 0 : index
    %c0_1 = arith.constant 0 : index
    %c0_2 = arith.constant 0 : index
    %c0_3 = arith.constant 0 : index
    %0 = vector.load %arg2[%c0, %c0_0, %c0_1, %c0_2, %c0_3] : memref<1x8x2x8x8xf32, #tpu.memory_space<vmem>>, vector<1x8x1x8x8xf32>
    %1 = vector.shape_cast %0 : vector<1x8x1x8x8xf32> to vector<8x8x8xf32>
    %2 = vector.shape_cast %1 : vector<8x8x8xf32> to vector<64x8xf32>
    %c0_4 = arith.constant 0 : index
    %c0_5 = arith.constant 0 : index
    %c1 = arith.constant 1 : index
    %c0_6 = arith.constant 0 : index
    %c0_7 = arith.constant 0 : index
    %3 = vector.load %arg2[%c0_4, %c0_5, %c1, %c0_6, %c0_7] : memref<1x8x2x8x8xf32, #tpu.memory_space<vmem>>, vector<1x8x1x8x8xf32>
    %4 = vector.shape_cast %3 : vector<1x8x1x8x8xf32> to vector<8x8x8xf32>
    %5 = vector.shape_cast %4 : vector<8x8x8xf32> to vector<64x8xf32>
    %cst = arith.constant dense<0.000000e+00> : vector<64xf32>
    %6 = vector.multi_reduction <add>, %2, %cst [1] : vector<64x8xf32> to vector<64xf32>
    %7 = vector.shape_cast %6 : vector<64xf32> to vector<64x1xf32>
    %cst_8 = arith.constant dense<0.000000e+00> : vector<64xf32>
    %8 = vector.multi_reduction <add>, %5, %cst_8 [1] : vector<64x8xf32> to vector<64xf32>
    %9 = vector.shape_cast %8 : vector<64xf32> to vector<64x1xf32>
    %10 = arith.addf %7, %9 : vector<64x1xf32>
    %11 = arith.mulf %2, %2 : vector<64x8xf32>
    %cst_9 = arith.constant dense<0.000000e+00> : vector<64xf32>
    %12 = vector.multi_reduction <add>, %11, %cst_9 [1] : vector<64x8xf32> to vector<64xf32>
    %13 = vector.shape_cast %12 : vector<64xf32> to vector<64x1xf32>
    %14 = arith.mulf %5, %5 : vector<64x8xf32>
    %cst_10 = arith.constant dense<0.000000e+00> : vector<64xf32>
    %15 = vector.multi_reduction <add>, %14, %cst_10 [1] : vector<64x8xf32> to vector<64xf32>
    %16 = vector.shape_cast %15 : vector<64xf32> to vector<64x1xf32>
    %17 = arith.addf %13, %16 : vector<64x1xf32>
    %cst_11 = arith.constant 1.600000e+01 : f32
    %18 = vector.broadcast %cst_11 : f32 to vector<64x1xf32>
    %19 = arith.divf %10, %18 : vector<64x1xf32>
    %cst_12 = arith.constant 1.600000e+01 : f32
    %20 = vector.broadcast %cst_12 : f32 to vector<64x1xf32>
    %21 = arith.divf %17, %20 : vector<64x1xf32>
    %22 = arith.mulf %19, %19 : vector<64x1xf32>
    %23 = arith.subf %21, %22 : vector<64x1xf32>
    %cst_13 = arith.constant 9.99999974E-6 : f32
    %24 = vector.broadcast %cst_13 : f32 to vector<64x1xf32>
    %25 = arith.addf %23, %24 : vector<64x1xf32>
    %26 = math.rsqrt %25 : vector<64x1xf32>
    %c0_14 = arith.constant 0 : index
    %c0_15 = arith.constant 0 : index
    %27 = vector.load %arg3[%c0_14, %c0_15] : memref<8x8xf32, #tpu.memory_space<vmem>>, vector<8x8xf32>
    %cst_16 = arith.constant dense<0.000000e+00> : vector<64x8xf32>
    %28 = tpu.matmul %2, %27, %cst_16 {dimension_numbers = #tpu.dot_dimension_numbers<[1], [0], [0], [1], [0, 0, 1, 1], [], []>} : vector<64x8xf32>, vector<8x8xf32>, vector<64x8xf32> -> vector<64x8xf32>
    %c0_17 = arith.constant 0 : index
    %c0_18 = arith.constant 0 : index
    %29 = vector.load %arg4[%c0_17, %c0_18] : memref<8x8xf32, #tpu.memory_space<vmem>>, vector<8x8xf32>
    %cst_19 = arith.constant dense<0.000000e+00> : vector<64x8xf32>
    %30 = tpu.matmul %5, %29, %cst_19 {dimension_numbers = #tpu.dot_dimension_numbers<[1], [0], [0], [1], [0, 0, 1, 1], [], []>} : vector<64x8xf32>, vector<8x8xf32>, vector<64x8xf32> -> vector<64x8xf32>
    %31 = arith.addf %28, %30 : vector<64x8xf32>
    %32 = vector.broadcast %26 : vector<64x1xf32> to vector<64x8xf32>
    %33 = arith.mulf %31, %32 : vector<64x8xf32>
    %34 = arith.mulf %19, %26 : vector<64x1xf32>
    %c0_20 = arith.constant 0 : index
    %c0_21 = arith.constant 0 : index
    %35 = vector.load %arg5[%c0_20, %c0_21] : memref<1x8xf32, #tpu.memory_space<vmem>>, vector<1x8xf32>
    %36 = vector.broadcast %34 : vector<64x1xf32> to vector<64x8xf32>
    %37 = vector.broadcast %35 : vector<1x8xf32> to vector<64x8xf32>
    %38 = arith.mulf %36, %37 : vector<64x8xf32>
    %39 = arith.subf %33, %38 : vector<64x8xf32>
    %c0_22 = arith.constant 0 : index
    %c0_23 = arith.constant 0 : index
    %40 = vector.load %arg6[%c0_22, %c0_23] : memref<1x8xf32, #tpu.memory_space<vmem>>, vector<1x8xf32>
    %41 = vector.broadcast %40 : vector<1x8xf32> to vector<64x8xf32>
    %42 = arith.addf %39, %41 : vector<64x8xf32>
    %43 = vector.shape_cast %42 : vector<64x8xf32> to vector<8x8x8xf32>
    %c0_24 = arith.constant 0 : index
    %c0_25 = arith.constant 0 : index
    %c0_26 = arith.constant 0 : index
    %c0_27 = arith.constant 0 : index
    %44 = vector.load %arg7[%c0_24, %c0_25, %c0_26, %c0_27] : memref<1x8x8x8xf32, #tpu.memory_space<vmem>>, vector<1x8x8x8xf32>
    %45 = vector.shape_cast %44 : vector<1x8x8x8xf32> to vector<8x8x8xf32>
    %46 = vector.shape_cast %43 : vector<8x8x8xf32> to vector<1x8x8x8xf32>
    tpu.vector_store %arg7[%c0_24, %c0_25, %c0_26, %c0_27], %46 {strides = array<i32>} : memref<1x8x8x8xf32, #tpu.memory_space<vmem>>, vector<1x8x8x8xf32>,
    return
  }
  func.func @transform_0(%arg0: i32, %arg1: i32) -> (i32, i32, i32, i32, i32) {
    %c0_i32 = arith.constant 0 : i32
    %c0_i32_0 = arith.constant 0 : i32
    %c0_i32_1 = arith.constant 0 : i32
    %c0_i32_2 = arith.constant 0 : i32
    return %arg0, %arg1, %c0_i32, %c0_i32_0, %c0_i32_1 : i32, i32, i32, i32, i32
  }
  func.func @transform_1(%arg0: i32, %arg1: i32) -> (i32, i32) {
    %c0_i32 = arith.constant 0 : i32
    %c0_i32_0 = arith.constant 0 : i32
    %c0_i32_1 = arith.constant 0 : i32
    return %c0_i32, %c0_i32_0 : i32, i32
  }
  func.func @transform_2(%arg0: i32, %arg1: i32) -> (i32, i32) {
    %c0_i32 = arith.constant 0 : i32
    %c0_i32_0 = arith.constant 0 : i32
    %c0_i32_1 = arith.constant 0 : i32
    return %c0_i32, %c0_i32_0 : i32, i32
  }
  func.func @transform_3(%arg0: i32, %arg1: i32) -> (i32, i32) {
    %c0_i32 = arith.constant 0 : i32
    %c0_i32_0 = arith.constant 0 : i32
    %c0_i32_1 = arith.constant 0 : i32
    return %c0_i32, %c0_i32_0 : i32, i32
  }
  func.func @transform_4(%arg0: i32, %arg1: i32) -> (i32, i32) {
    %c0_i32 = arith.constant 0 : i32
    %c0_i32_0 = arith.constant 0 : i32
    %c0_i32_1 = arith.constant 0 : i32
    return %c0_i32, %c0_i32_0 : i32, i32
  }
  func.func @transform_5(%arg0: i32, %arg1: i32) -> (i32, i32, i32, i32) {
    %c0_i32 = arith.constant 0 : i32
    %c0_i32_0 = arith.constant 0 : i32
    %c0_i32_1 = arith.constant 0 : i32
    return %arg0, %arg1, %c0_i32, %c0_i32_0 : i32, i32, i32, i32
  }
}

</mosaic_0001>

<bundles_post_ra>
// kernel: tpu_custom_call.1
= control target key start
LH: loop header
LB: loop body
LE: loop exit
PB: predicated region body
PF: predicated region fallthrough
CT: control target
= control target key end

     0   :  { %s1798_s0 = inlined_call_operand.hbm [shape: f32[2,8,2,8,8], index: 0, kind: input, shape index: {}]   ;;  %s1799_s1 = inlined_call_operand.hbm [shape: f32[8,8], index: 1, kind: input, shape index: {}]   ;;  %s1800_s2 = inlined_call_operand.hbm [shape: f32[8,8], index: 2, kind: input, shape index: {}]   ;;  %s1801_s3 = inlined_call_operand.vmem [shape: f32[1,8], index: 3, kind: input, shape index: {}]   ;;  %s1802_s4 = inlined_call_operand.vmem [shape: f32[1,8], index: 4, kind: input, shape index: {}]   ;;  %s1803_s5 = inlined_call_operand.hbm [shape: f32[2,8,8,8], index: 5, kind: output, shape index: {}]  }
   0x1   :  { %1810 = sst [smem:[#allocation12_spill]] %s1799_s1 }
   0x2   :  { %10 = vsyncpa [#allocation3], 0 }
   0x3   :  { %12 = vsyncpa [#allocation3 + $0x1], 0 }
   0x4   :  { %13 = vsyncpa [#allocation6], 0 }
   0x5   :  { %14 = vsyncpa [#allocation4], 0 }
   0x6   :  { %16 = vsyncpa [#allocation4 + $0x1], 0  ;;  %s1344_s18 = smov 0   ;;  %s1346_s19 = smov 0  }
   0x7   :  { %s1348_s20 = smov 0   ;;  %s1350_s21 = smov 0  }
   0x8   :  { %s1352_s22 = smov 0   ;;  %s1354_s23 = smov 0  }
   0x9 LB: > { %s928_s24 = sadd.s32 4294967295, %s1304_s23   ;;  %s929_s25 = sadd.s32 4294967294, %s1304_s23   ;;  %s1304_s23 = sphi %s1354_s23, %s22_s23   ;;  %s1300_s22 = sphi %s1352_s22, %s1831_s22   ;;  %s1296_s21 = sphi %s1350_s21, %s1830_s21   ;;  %s1292_s20 = sphi %s1348_s20, %s1829_s20   ;;  %s1288_s19 = sphi %s1346_s19, %s1828_s19   ;;  %s1284_s18 = sphi %s1344_s18, %s1827_s18  }
   0xa   : > { %s43_s26 = sadd.s32 1, %s1292_s20  ;;  %p50_p0 = scmp.ne.s32.totalorder %s1292_s20, %s1288_s19 }
   0xb   : > { %p51_p1 = scmp.eq.s32.totalorder %s1304_s23, 0  ;;  %p56_p2 = scmp.ne.s32.totalorder %s1288_s19, %s1284_s18 }
   0xc   : > { %p1382_p3 = scmp.eq.s32.totalorder %s928_s24, 0  ;;  %p166_p4 = scmp.eq.s32.totalorder %s928_s24, 1 }
   0xd   : > { %p1386_p5 = por %p51_p1, %p50_p0  ;;  %p172_p6 = scmp.eq.s32.totalorder %s929_s25, 1 }
   0xe   : > { %s1811_s27 = scalar_select %p1382_p3, 1, 0 }
   0xf   : > { %p1392_p7 = por %p1382_p3, %p56_p2  ;;  %p1396_p8 = por %p166_p4, %p50_p0 }
  0x10   : > { %p1400_p9 = por %p172_p6, %p56_p2  ;;  %p930_p10 = scmp.ge.s32.totalorder %s1304_s23, 1 }
  0x11   : > { %s1813_s29 = scalar_select %p1392_p7, 1, 0 }
  0x12   : > { %s1814_s30 = scalar_select %p1396_p8, 1, 0 }
  0x13   : > { %s1815_s6 = scalar_select %p1400_p9, 1, 0 }
  0x14   : > { %p179_p11 = scmp.lt.s32.totalorder %s1304_s23, 3  ;;  %s1306_s8 = smov [#allocation5]  }
  0x15   : > { %s192_s9 = sshll.u32 %s1306_s8, 4  ;;  %p1058_p1 = scmp.lt.s32.totalorder %s1304_s23, 2  ;;  %s193_s9 = int_to_ptr.vmem [resolvable:$true] %s192_s9 }
  0x16   : > { %p1407_p13 = pnand %p930_p10, %p179_p11  ;;  %s1307_s11 = smov [#allocation7]  }
  0x17   : > { %p1416_p4 = pnand %p1058_p1, %p1386_p5  ;;  %s203_s12 = sshll.u32 %s1307_s11, 4  ;;  %s1426_s12 = int_to_ptr.vmem [resolvable:$true] %s203_s12 }
  0x18   : > { %s1816_s7 = scalar_select %p1407_p13, 1, 0 }
  0x19   : > { %p1041_p0 = pneg %p1407_p13  ;;  %s1819_s1 = sld [smem:[#allocation12_spill]] }
  0x1a   : > { %s1817_s10 = scalar_select %p1416_p4, 1, 0 }
  0x1b   : > { %p1422_p2 = pnand %p1041_p0, %p1382_p3 }
  0x1d   : > { %p1134_p6 = pneg %p1422_p2 }
  0x1f   : > { %s1132_s16 = scalar_lea.hbm %s1819_s1, 128 }
  0x20   : > { %p1133_p5 = scmp.ne.s32.totalorder %s1819_s1, %s1132_s16  ;;  %p1139_p1 = scmp.lt.u32.totalorder %s1132_s16, %s1819_s1 }
  0x22   : > { %p1135_p10 = pnand %p1134_p6, %p1133_p5 }
  0x24   : > { %p1136_p11 = pneg %p1135_p10 }
  0x26   : > { %p1141_p0 = pnand %p1139_p1, %p1136_p11 }
  0x28   : > { %1144 = shalt.err (!%p1141_p0)
}
  0x29   : > { %s1145_s8 = scalar_lea.vmem %s193_s9, 128  ;;  %p1153_p3 = scmp.lt.s32.totalorder %s193_s9, %s193_s9 }
  0x2a   : > { %p1146_p12 = scmp.ne.s32.totalorder %s193_s9, %s1145_s8  ;;  %p1154_p7 = scmp.lt.s32.totalorder %s1145_s8, %s1145_s8 }
  0x2c   : > { %p1148_p9 = pnand %p1146_p12, %p1134_p6  ;;  %p1155_p13 = por %p1154_p7, %p1153_p3 }
  0x2e   : > { %p1149_p8 = pneg %p1148_p9 }
  0x30   : > { %p1156_p4 = pnand %p1155_p13, %p1149_p8 }
  0x32   : > { %1159 = shalt.err (!%p1156_p4)
}
  0x33   : > { %1044 = dma.hbm_to_vmem [thread:$0]  (!%p1422_p2), %s1819_s1, 128, %s193_s9, [#allocation6]  }
  0x34   : > { %s1160_s17 = scalar_lea.hbm %s1800_s2, 128 }
  0x35   : > { %p1161_p9 = scmp.ne.s32.totalorder %s1800_s2, %s1160_s17  ;;  %p1167_p8 = scmp.lt.u32.totalorder %s1160_s17, %s1800_s2 }
  0x37   : > { %p1163_p3 = pnand %p1161_p9, %p1134_p6 }
  0x39   : > { %p1164_p7 = pneg %p1163_p3 }
  0x3b   : > { %p1169_p12 = pnand %p1167_p8, %p1164_p7 }
  0x3d   : > { %1172 = shalt.err (!%p1169_p12)
}
  0x3e   : > { %s1173_s9 = scalar_lea.vmem %s1426_s12, 128  ;;  %p1181_p10 = scmp.lt.s32.totalorder %s1426_s12, %s1426_s12 }
  0x3f   : > { %p1174_p13 = scmp.ne.s32.totalorder %s1426_s12, %s1173_s9  ;;  %p1182_p11 = scmp.lt.s32.totalorder %s1173_s9, %s1173_s9 }
  0x41   : > { %p1176_p4 = pnand %p1174_p13, %p1134_p6  ;;  %p1183_p1 = por %p1182_p11, %p1181_p10 }
  0x43   : > { %p1177_p5 = pneg %p1176_p4 }
  0x45   : > { %p1184_p0 = pnand %p1183_p1, %p1177_p5 }
  0x47   : > { %1187 = shalt.err (!%p1184_p0)
}
  0x48   : > { %1047 = dma.hbm_to_vmem [thread:$0]  (!%p1422_p2), %s1800_s2, 128, %s1426_s12, [#allocation6]  }
  0x49   : > { %s34_s15 = sadd.s32 1, %s1300_s22  ;;  %s220_s16 = sand.u32 1, %s1292_s20  }
  0x4a   : > { %p36_p6 = scmp.ge.s32.totalorder %s34_s15, 2  ;;  %s934_s17 = sshll.u32 %s220_s16, 7 }
  0x4b   : > { %s973_s24 = sshll.u32 %s1300_s22, 11  ;;  %s224_s12 = scalar_lea.vmem [#allocation2], %s934_s17 }
  0x4c   : > { %s1833_s15 = smov (%p36_p6, %s34_s15), 0  ;;  %s1483_s28 = scalar_lea.hbm %s1798_s0, %s973_s24 }
  0x4d   : > { %s38_s8 = ssub.s32 %s1300_s22, %s1833_s15  ;;  %s234_s9 = sshll.u32 %s224_s12, 4  ;;  %s1487_s9 = int_to_ptr.vmem [resolvable:$true] %s234_s9 }
  0x4e   : > { %p41_p2 = scmp.eq.s32.totalorder %s38_s8, 0  ;;  %s1494_s14 = scalar_lea.sflag [#allocation3], %s220_s16 }
  0x4f   : > { %s1188_s1 = scalar_lea.hbm %s1483_s28, 2048  ;;  %p1820_p3 = scmp.ne.s32.totalorder %s1817_s10, 0 }
  0x50   : > { %s1492_s11 = scalar_select %p41_p2, %s1292_s20, %s43_s26  }
  0x51   : > { %p1189_p9 = scmp.ne.s32.totalorder %s1483_s28, %s1188_s1  ;;  %p1190_p7 = pneg %p1820_p3 }
  0x52   : > { %s1193_s17 = scalar_lea.hbm %s1798_s0, 4096  ;;  %p1194_p13 = scmp.lt.u32.totalorder %s1483_s28, %s1798_s0 }
  0x53   : > { %p1191_p8 = pnand %p1190_p7, %p1189_p9  ;;  %p1195_p4 = scmp.lt.u32.totalorder %s1193_s17, %s1188_s1 }
  0x54   : > { %p1197_p10 = scmp.lt.u32.totalorder %s1188_s1, %s1483_s28 }
  0x55   : > { %p1192_p12 = pneg %p1191_p8  ;;  %p1196_p5 = por %p1195_p4, %p1194_p13 }
  0x57   : > { %p1198_p11 = por %p1197_p10, %p1196_p5 }
  0x59   : > { %p1199_p1 = pnand %p1198_p11, %p1192_p12 }
  0x5b   : > { %1202 = shalt.err (!%p1199_p1)
}
  0x5c   : > { %s1203_s26 = scalar_lea.vmem %s1487_s9, 2048  ;;  %s1308_s16 = smov [#allocation2]  }
  0x5d   : > { %p1204_p0 = scmp.ne.s32.totalorder %s1487_s9, %s1203_s26  ;;  %s1208_s12 = sshll.u32 %s1308_s16, 4  ;;  %s1209_s12 = int_to_ptr.vmem [resolvable:$false] %s1208_s12 }
  0x5e   : > { %s1210_s24 = scalar_lea.vmem %s1209_s12, 4096  ;;  %p1211_p9 = scmp.lt.s32.totalorder %s1487_s9, %s1209_s12 }
  0x5f   : > { %p1206_p6 = pnand %p1204_p0, %p1190_p7  ;;  %p1212_p8 = scmp.lt.s32.totalorder %s1210_s24, %s1203_s26 }
  0x61   : > { %p1207_p2 = pneg %p1206_p6  ;;  %p1213_p13 = por %p1212_p8, %p1211_p9 }
  0x63   : > { %p1214_p4 = pnand %p1213_p13, %p1207_p2 }
  0x65   : > { %1217 = shalt.err (!%p1214_p4)
}
  0x66   : > { %s1309_s1 = smov 128   ;;  %s1310_s13 = smov 8  }
  0x67   : > { %1051 = dma.hbm_to_vmem [thread:$0]  (!%p1820_p3), %s1483_s28, 2048, %s1487_s9, %s1494_s14, %s1309_s1, %s1309_s1, %s1310_s13  }
  0x68   : > { %p1821_p7 = scmp.ne.s32.totalorder %s1816_s7, 0 }
  0x69   : > { %s1525_s17 = sand.u32 (!%p1821_p7), 1, %s1288_s19   ;;  %p1822_p12 = scmp.ne.s32.totalorder (!%p1821_p7), %s1813_s29, 0 }
  0x6a   : > { %246 = sbr.rel (%p1821_p7) target bundleno = 370 (0x172), region = 40  ;;  %s938_s25 = sshll.u32 (!%p1821_p7), %s1525_s17, 7 }
  0x6b   : > { %s249_s8 = scalar_lea.sflag (!%p1821_p7), [#allocation3], %s1525_s17  ;;  %s1529_s26 = scalar_lea.vmem (!%p1821_p7), [#allocation2], %s938_s25 }
  0x71   : > { %1271 = dma.done.wait (%p1822_p12), %s249_s8, 2048  }
  0x72   : > { %1273 = vsyncadd (%p1822_p12), %s249_s8, 4294965248  ;;  %p1823_p3 = scmp.ne.s32.totalorder %s1811_s27, 0 }
  0x74   : > { %1275 = dma.done.wait (%p1823_p3), [#allocation6], 256  }
  0x75   : > { %1277 = vsyncadd (%p1823_p3), [#allocation6], 4294967040  ;;  %vm306_vm0 = vcmask 64512   ;;  %v485_v0 = vld [vmem:[#allocation7] sm:$0xff]  ;;  %v484_v1 = vld [vmem:[#allocation5] sm:$0xff]  ;;  %s941_s7 = sshll.u32 %s1525_s17, 6 }
  0x76   : > { %v1540_v2 = vld [vmem:[%s1529_s26 + $0x8] sm:$0xff]  ;;  %993 = vmatprep.subr.mxu1 %v485_v0  ;;  %1007 = vmatprep.subr.mxu0 %v484_v1  ;;  %v1543_v3 = vld [vmem:[%s1529_s26 + $0x20] sm:$0xff]  ;;  %v1555_v7 = vld [vmem:[%s1529_s26 + $0x18] sm:$0xff]  ;;  %s1712_s9 = scalar_lea.vmem [#allocation8], %s941_s7  ;;  %s974_s14 = sshll.u32 %s1296_s21, 10 }
  0x77   : > { %v1546_v4 = vld [vmem:[%s1529_s26] sm:$0xff]  ;;  %994 = vmatpush3.msra.mxu1 %v485_v0  ;;  %995 = vmatprep.mubr.msk.f32.mxu1 %vm306_vm0, %v1540_v2  ;;  %v313_v5 = vsel %vm306_vm0, %v1543_v3, 0.0  ;;  %v290_v8 = vld [vmem:[%s1529_s26 + $0x10] sm:$0xff]  ;;  %v1560_v10 = vld [vmem:[%s1529_s26 + $0x28] sm:$0xff]  ;;  %v334_v26 = vsel %vm306_vm0, %v1555_v7, 0.0  ;;  %v331_v27 = vsel %vm306_vm0, %v1540_v2, 0.0  ;;  %v365_v39 = vmul.f32 %v1543_v3, %v1543_v3  ;;  %s1742_s1 = scalar_lea.hbm %s1803_s5, %s974_s14 }
  0x78   : > { %v307_v6 = vsel %vm306_vm0, %v1546_v4, 0.0  ;;  %v292_v9 = vld [vmem:[%s1529_s26 + $0x30] sm:$0xff]  ;;  %1008 = vmatpush3.msra.mxu0 %v484_v1  ;;  %314 = vadd.xlane.f32.xlu1 %v313_v5  ;;  %v310_v12 = vsel %vm306_vm0, %v290_v8, 0.0  ;;  %v1575_v14 = vld [vmem:[%s1529_s26 + $0x38] sm:$0xff]  ;;  %v293_v15 = vld [vmem:[%s1529_s26 + $0x40] sm:$0xff]  ;;  %v337_v29 = vsel %vm306_vm0, %v1560_v10, 0.0  ;;  %v364_v33 = vmul.f32 %v290_v8, %v290_v8 }
  0x79   : > { %1009 = vmatprep.mubr.msk.f32.mxu0 %vm306_vm0, %v1546_v4  ;;  %308 = vadd.xlane.f32.xlu0 %v307_v6  ;;  %v316_v11 = vsel %vm306_vm0, %v292_v9, 0.0  ;;  %v294_v13 = vld [vmem:[%s1529_s26 + $0x50] sm:$0xff]  ;;  %v1579_v16 = vld [vmem:[%s1529_s26 + $0x48] sm:$0xff]  ;;  %v319_v18 = vsel %vm306_vm0, %v293_v15, 0.0  ;;  %v1591_v20 = vld [vmem:[%s1529_s26 + $0x58] sm:$0xff]  ;;  %v340_v28 = vsel %vm306_vm0, %v1575_v14, 0.0  ;;  %v363_v35 = vmul.f32 %v1546_v4, %v1546_v4 }
  0x7a   : > { %996 = vmatmul.mubr.msk.f32.vlgmr.msra.gmra.mrb[0].mxu1 %vm306_vm0, %v1555_v7  ;;  %1010 = vmatmul.mubr.msk.f32.vlgmr.msra.gmra.mrb[0].mxu0 %vm306_vm0, %v290_v8  ;;  %v322_v17 = vsel %vm306_vm0, %v294_v13, 0.0  ;;  %v296_v19 = vld [vmem:[%s1529_s26 + $0x70] sm:$0xff]  ;;  %v295_v21 = vld [vmem:[%s1529_s26 + $0x60] sm:$0xff]  ;;  %v1595_v22 = vld [vmem:[%s1529_s26 + $0x68] sm:$0xff]  ;;  %v346_v30 = vsel %vm306_vm0, %v1591_v20, 0.0  ;;  %v343_v31 = vsel %vm306_vm0, %v1579_v16, 0.0  ;;  %v366_v37 = vmul.f32 %v292_v9, %v292_v9 }
  0x7b   : > { %998 = vmatprep.mubr.msk.f32.mxu1 %vm306_vm0, %v1560_v10  ;;  %1012 = vmatprep.mubr.msk.f32.mxu0 %vm306_vm0, %v1543_v3  ;;  %v328_v23 = vsel %vm306_vm0, %v296_v19, 0.0  ;;  %v325_v24 = vsel %vm306_vm0, %v295_v21, 0.0  ;;  %v949_v25 = vld [vmem:[%s1529_s26 + $0x78] sm:$0xff]  ;;  %v349_v34 = vsel %vm306_vm0, %v1595_v22, 0.0  ;;  %v374_v36 = vsel %vm306_vm0, %v364_v33, 0.0  ;;  %s822_s16 = sshll.u32 %s1712_s9, 4  ;;  %s1744_s16 = int_to_ptr.vmem [resolvable:$true] %s822_s16 }
  0x7c   : > { %317 = vadd.xlane.f32.xlu1 %v316_v11  ;;  %v352_v32 = vsel %vm306_vm0, %v949_v25, 0.0  ;;  %v371_v38 = vsel %vm306_vm0, %v363_v35, 0.0  ;;  %v380_v40 = vsel %vm306_vm0, %v366_v37, 0.0  ;;  %v368_v41 = vmul.f32 %v294_v13, %v294_v13  ;;  %s807_s21 = scalar_lea.sflag [#allocation4], %s1525_s17  ;;  %s1218_s13 = scalar_lea.vmem %s1744_s16, 1024 }
  0x7d   : > { %311 = vadd.xlane.f32.xlu0 %v310_v12  ;;  %v377_v42 = vsel %vm306_vm0, %v365_v39, 0.0  ;;  %v367_v43 = vmul.f32 %v293_v15, %v293_v15  ;;  %v370_v45 = vmul.f32 %v296_v19, %v296_v19  ;;  %v369_v47 = vmul.f32 %v295_v21, %v295_v21  ;;  %p1219_p5 = scmp.ne.s32.totalorder %s1744_s16, %s1218_s13  ;;  %p1824_p10 = scmp.ne.s32.totalorder %s1814_s30, 0 }
  0x7e   : > { %999 = vmatmul.mubr.msk.f32.gmra.mrb[2].mxu1 %vm306_vm0, %v1575_v14  ;;  %1013 = vmatmul.mubr.msk.f32.gmra.mrb[2].mxu0 %vm306_vm0, %v292_v9  ;;  %v386_v44 = vsel %vm306_vm0, %v368_v41, 0.0  ;;  %v396_v49 = vmul.f32 %v1555_v7, %v1555_v7  ;;  %v395_v51 = vmul.f32 %v1540_v2, %v1540_v2  ;;  %v398_v53 = vmul.f32 %v1575_v14, %v1575_v14  ;;  %s1311_s25 = smov [#allocation8]  }
  0x7f   : > { %1001 = vmatprep.mubr.msk.f32.mxu1 %vm306_vm0, %v1579_v16  ;;  %1015 = vmatprep.mubr.msk.f32.mxu0 %vm306_vm0, %v293_v15  ;;  %v383_v46 = vsel %vm306_vm0, %v367_v43, 0.0  ;;  %v392_v48 = vsel %vm306_vm0, %v370_v45, 0.0  ;;  %v389_v50 = vsel %vm306_vm0, %v369_v47, 0.0  ;;  %v397_v55 = vmul.f32 %v1560_v10, %v1560_v10  ;;  %p1220_p11 = pnand %p1219_p5, %p1824_p10  ;;  %s1222_s8 = sshll.u32 %s1311_s25, 4  ;;  %s1223_s8 = int_to_ptr.vmem [resolvable:$false] %s1222_s8 }
  0x80   : > { %323 = vadd.xlane.f32.xlu1 %v322_v17  ;;  %v406_v52 = vsel %vm306_vm0, %v396_v49, 0.0  ;;  %v403_v54 = vsel %vm306_vm0, %v395_v51, 0.0  ;;  %v412_v56 = vsel %vm306_vm0, %v398_v53, 0.0  ;;  %v400_v57 = vmul.f32 %v1591_v20, %v1591_v20  ;;  %s1224_s26 = scalar_lea.vmem %s1223_s8, 2048  ;;  %p1225_p0 = scmp.lt.s32.totalorder %s1744_s16, %s1223_s8 }
  0x81   : > { %320 = vadd.xlane.f32.xlu0 %v319_v18  ;;  %v409_v58 = vsel %vm306_vm0, %v397_v55, 0.0  ;;  %v399_v59 = vmul.f32 %v1579_v16, %v1579_v16  ;;  %v402_v61 = vmul.f32 %v949_v25, %v949_v25  ;;  %v401_v63 = vmul.f32 %v1595_v22, %v1595_v22  ;;  %p1221_p1 = pneg %p1220_p11  ;;  %p1226_p6 = scmp.lt.s32.totalorder %s1224_s26, %s1218_s13 }
  0x82   : > { %1002 = vmatmul.mubr.msk.f32.gmra.mrb[4].mxu1 %vm306_vm0, %v1591_v20  ;;  %1016 = vmatmul.mubr.msk.f32.gmra.mrb[4].mxu0 %vm306_vm0, %v294_v13  ;;  %v418_v60 = vsel %vm306_vm0, %v400_v57, 0.0 }
  0x83   : > { %1004 = vmatprep.mubr.msk.f32.mxu1 %vm306_vm0, %v1595_v22  ;;  %1018 = vmatprep.mubr.msk.f32.mxu0 %vm306_vm0, %v295_v21  ;;  %v415_v62 = vsel %vm306_vm0, %v399_v59, 0.0  ;;  %v424_v0 = vsel %vm306_vm0, %v402_v61, 0.0  ;;  %v421_v1 = vsel %vm306_vm0, %v401_v63, 0.0  ;;  %p1227_p2 = por %p1226_p6, %p1225_p0 }
  0x84   : > { %329 = vadd.xlane.f32.xlu1 %v328_v23 }
  0x85   : > { %326 = vadd.xlane.f32.xlu0 %v325_v24  ;;  %p1228_p9 = pnand %p1227_p2, %p1221_p1 }
  0x86   : > { %1005 = vmatmul.mubr.msk.f32.gmra.mrb[6].mxu1 %vm306_vm0, %v949_v25  ;;  %1019 = vmatmul.mubr.msk.f32.gmra.mrb[6].mxu0 %vm306_vm0, %v296_v19 }
  0x88   : > { %335 = vadd.xlane.f32.xlu1 %v334_v26 }
  0x89   : > { %332 = vadd.xlane.f32.xlu0 %v331_v27 }
  0x8c   : > { %341 = vadd.xlane.f32.xlu1 %v340_v28 }
  0x8d   : > { %338 = vadd.xlane.f32.xlu0 %v337_v29 }
  0x90   : > { %347 = vadd.xlane.f32.xlu1 %v346_v30 }
  0x91   : > { %344 = vadd.xlane.f32.xlu0 %v343_v31 }
  0x94   : > { %353 = vadd.xlane.f32.xlu1 %v352_v32 }
  0x95   : > { %350 = vadd.xlane.f32.xlu0 %v349_v34 }
  0x98   : > { %375 = vadd.xlane.f32.xlu1 %v374_v36 }
  0x99   : > { %372 = vadd.xlane.f32.xlu0 %v371_v38 }
  0x9c   : > { %381 = vadd.xlane.f32.xlu1 %v380_v40 }
  0x9d   : > { %378 = vadd.xlane.f32.xlu0 %v377_v42 }
  0xa0   : > { %387 = vadd.xlane.f32.xlu1 %v386_v44 }
  0xa1   : > { %384 = vadd.xlane.f32.xlu0 %v383_v46 }
  0xa4   : > { %393 = vadd.xlane.f32.xlu1 %v392_v48 }
  0xa5   : > { %390 = vadd.xlane.f32.xlu0 %v389_v50 }
  0xa8   : > { %407 = vadd.xlane.f32.xlu1 %v406_v52 }
  0xa9   : > { %404 = vadd.xlane.f32.xlu0 %v403_v54 }
  0xac   : > { %413 = vadd.xlane.f32.xlu1 %v412_v56 }
  0xad   : > { %410 = vadd.xlane.f32.xlu0 %v409_v58 }
  0xb0   : > { %419 = vadd.xlane.f32.xlu1 %v418_v60 }
  0xb1   : > { %416 = vadd.xlane.f32.xlu0 %v415_v62 }
  0xb4   : > { %425 = vadd.xlane.f32.xlu1 %v424_v0 }
  0xb5   : > { %422 = vadd.xlane.f32.xlu0 %v421_v1 }
 0x105   : > { %v315_v2 = vpop.xlane.xlu1 %314 }
 0x106   : > { %v309_v3 = vpop.xlane.xlu0 %308 }
 0x109   : > { %v318_v4 = vpop.xlane.xlu1 %317 }
 0x10a   : > { %v312_v5 = vpop.xlane.xlu0 %311 }
 0x10d   : > { %v324_v6 = vpop.xlane.xlu1 %323 }
 0x10e   : > { %v321_v7 = vpop.xlane.xlu0 %320 }
 0x111   : > { %v330_v8 = vpop.xlane.xlu1 %329 }
 0x112   : > { %v327_v9 = vpop.xlane.xlu0 %326 }
 0x115   : > { %v336_v10 = vpop.xlane.xlu1 %335 }
 0x116   : > { %v333_v11 = vpop.xlane.xlu0 %332  ;;  %v356_v24 = vadd.f32 %v336_v10, %v312_v5 }
 0x117   : > { %v355_v25 = vadd.f32 %v333_v11, %v309_v3 }
 0x118   : > { %v1657_v29 = vmul.f32 0.0625, %v356_v24 }
 0x119   : > { %v342_v12 = vpop.xlane.xlu1 %341  ;;  %v1659_v31 = vmul.f32 0.0625, %v355_v25 }
 0x11a   : > { %v339_v13 = vpop.xlane.xlu0 %338  ;;  %v358_v28 = vadd.f32 %v342_v12, %v318_v4  ;;  %v453_v38 = vmul.f32 %v1657_v29, %v1657_v29 }
 0x11b   : > { %v357_v30 = vadd.f32 %v339_v13, %v315_v2  ;;  %v452_v41 = vmul.f32 %v1659_v31, %v1659_v31 }
 0x11c   : > { %v1661_v35 = vmul.f32 0.0625, %v358_v28 }
 0x11d   : > { %v348_v14 = vpop.xlane.xlu1 %347  ;;  %v1665_v39 = vmul.f32 0.0625, %v357_v30 }
 0x11e   : > { %v345_v15 = vpop.xlane.xlu0 %344  ;;  %v360_v36 = vadd.f32 %v348_v14, %v324_v6  ;;  %v455_v48 = vmul.f32 %v1661_v35, %v1661_v35 }
 0x11f   : > { %v359_v42 = vadd.f32 %v345_v15, %v321_v7  ;;  %v454_v52 = vmul.f32 %v1665_v39, %v1665_v39 }
 0x120   : > { %v1671_v49 = vmul.f32 0.0625, %v360_v36 }
 0x121   : > { %v354_v16 = vpop.xlane.xlu1 %353  ;;  %v1675_v56 = vmul.f32 0.0625, %v359_v42 }
 0x122   : > { %v351_v17 = vpop.xlane.xlu0 %350  ;;  %v362_v53 = vadd.f32 %v354_v16, %v330_v8  ;;  %v457_v0 = vmul.f32 %v1671_v49, %v1671_v49 }
 0x123   : > { %v361_v57 = vadd.f32 %v351_v17, %v327_v9  ;;  %v456_v6 = vmul.f32 %v1675_v56, %v1675_v56 }
 0x124   : > { %v1679_v3 = vmul.f32 0.0625, %v362_v53 }
 0x125   : > { %v376_v18 = vpop.xlane.xlu1 %375  ;;  %v1683_v7 = vmul.f32 0.0625, %v361_v57 }
 0x126   : > { %v373_v19 = vpop.xlane.xlu0 %372  ;;  %v459_v16 = vmul.f32 %v1679_v3, %v1679_v3 }
 0x129   : > { %v382_v20 = vpop.xlane.xlu1 %381 }
 0x12a   : > { %v379_v21 = vpop.xlane.xlu0 %378 }
 0x12d   : > { %v388_v22 = vpop.xlane.xlu1 %387 }
 0x12e   : > { %v385_v23 = vpop.xlane.xlu0 %384 }
 0x131   : > { %v394_v26 = vpop.xlane.xlu1 %393 }
 0x132   : > { %v391_v27 = vpop.xlane.xlu0 %390 }
 0x135   : > { %v408_v32 = vpop.xlane.xlu1 %407 }
 0x136   : > { %v428_v33 = vadd.f32 %v408_v32, %v376_v18  ;;  %v405_v34 = vpop.xlane.xlu0 %404 }
 0x137   : > { %v427_v37 = vadd.f32 %v405_v34, %v373_v19  ;;  %v458_v19 = vmul.f32 %v1683_v7, %v1683_v7  ;;  %v1693_v34 = vld [vmem:[%s1801_s3] ss:$0 sm:$0xff] }
 0x138   : > { %v445_v40 = vmul.f32 0.0625, %v428_v33 }
 0x139   : > { %v444_v43 = vmul.f32 0.0625, %v427_v37  ;;  %v414_v44 = vpop.xlane.xlu1 %413 }
 0x13a   : > { %v461_v45 = vsub.f32 %v445_v40, %v453_v38  ;;  %v430_v46 = vadd.f32 %v414_v44, %v382_v20  ;;  %v411_v47 = vpop.xlane.xlu0 %410 }
 0x13b   : > { %v460_v50 = vsub.f32 %v444_v43, %v452_v41  ;;  %v429_v51 = vadd.f32 %v411_v47, %v379_v21 }
 0x13c   : > { %v469_v54 = vadd.f32 1e-05, %v461_v45  ;;  %v447_v55 = vmul.f32 0.0625, %v430_v46  ;;  %v1702_v46 = vld [vmem:[%s1802_s4] ss:$0 sm:$0xff] }
 0x13d   : > { %v468_v58 = vadd.f32 1e-05, %v460_v50  ;;  %v446_v59 = vmul.f32 0.0625, %v429_v51  ;;  %v420_v60 = vpop.xlane.xlu1 %419 }
 0x13e   : > { %v463_v61 = vsub.f32 %v447_v55, %v455_v48  ;;  %v432_v62 = vadd.f32 %v420_v60, %v388_v22  ;;  %v417_v63 = vpop.xlane.xlu0 %416  ;;  %1116 = vrsqrt.f32 %v469_v54 }
 0x13f   : > { %v462_v1 = vsub.f32 %v446_v59, %v454_v52  ;;  %v431_v2 = vadd.f32 %v417_v63, %v385_v23  ;;  %1118 = vrsqrt.f32 %v468_v58 }
 0x140   : > { %v471_v4 = vadd.f32 1e-05, %v463_v61  ;;  %v449_v5 = vmul.f32 0.0625, %v432_v62 }
 0x141   : > { %v470_v8 = vadd.f32 1e-05, %v462_v1  ;;  %v448_v9 = vmul.f32 0.0625, %v431_v2  ;;  %v426_v10 = vpop.xlane.xlu1 %425 }
 0x142   : > { %v465_v11 = vsub.f32 %v449_v5, %v457_v0  ;;  %v434_v12 = vadd.f32 %v426_v10, %v394_v26  ;;  %v423_v13 = vpop.xlane.xlu0 %422  ;;  %1120 = vrsqrt.f32 %v471_v4 }
 0x143   : > { %v464_v14 = vsub.f32 %v448_v9, %v456_v6  ;;  %v433_v15 = vadd.f32 %v423_v13, %v391_v27  ;;  %1122 = vrsqrt.f32 %v470_v8 }
 0x144   : > { %v473_v17 = vadd.f32 1e-05, %v465_v11  ;;  %v451_v18 = vmul.f32 0.0625, %v434_v12 }
 0x145   : > { %v472_v20 = vadd.f32 1e-05, %v464_v14  ;;  %v450_v21 = vmul.f32 0.0625, %v433_v15 }
 0x146   : > { %v467_v22 = vsub.f32 %v451_v18, %v459_v16  ;;  %1124 = vrsqrt.f32 %v473_v17 }
 0x147   : > { %v466_v23 = vsub.f32 %v450_v21, %v458_v19  ;;  %1126 = vrsqrt.f32 %v472_v20 }
 0x148   : > { %v475_v24 = vadd.f32 1e-05, %v467_v22  ;;  %v1117_v25 = vpop.eup %1116 }
 0x149   : > { %v474_v26 = vadd.f32 1e-05, %v466_v23  ;;  %v1119_v27 = vpop.eup %1118  ;;  %v753_v28 = vmul.f32 %v1117_v25, %v1657_v29 }
 0x14a   : > { %1128 = vrsqrt.f32 %v475_v24  ;;  %v752_v36 = vmul.f32 %v1119_v27, %v1659_v31 }
 0x14b   : > { %1130 = vrsqrt.f32 %v474_v26  ;;  %v768_v44 = vmul.f32 %v1693_v34, %v753_v28 }
 0x14c   : > { %v1121_v30 = vpop.eup %1120  ;;  %v767_v31 = vmul.f32 %v1693_v34, %v752_v36 }
 0x14d   : > { %v997_v32 = vpop.f32.mrb[0].mxu1  ;;  %v1011_v33 = vpop.f32.mrb[0].mxu0  ;;  %v755_v29 = vmul.f32 %v1121_v30, %v1661_v35 }
 0x14e   : > { %v1123_v37 = vpop.eup %1122  ;;  %v711_v38 = vadd.f32 %v1011_v33, %v997_v32  ;;  %v576_v40 = vpop.f32.mrb[1].mxu1 }
 0x14f   : > { %v705_v41 = vpop.f32.mrb[1].mxu0  ;;  %v754_v51 = vmul.f32 %v1123_v37, %v1665_v39  ;;  %v770_v61 = vmul.f32 %v1693_v34, %v755_v29 }
 0x150   : > { %v706_v42 = vadd.f32 %v705_v41, %v576_v40  ;;  %v745_v43 = vmul.f32 %v1117_v25, %v711_v38  ;;  %v1125_v45 = vpop.eup %1124 }
 0x151   : > { %v1000_v48 = vpop.f32.mrb[2].mxu1  ;;  %v1014_v50 = vpop.f32.mrb[2].mxu0  ;;  %v757_v62 = vmul.f32 %v1125_v45, %v1671_v49  ;;  %v769_v39 = vmul.f32 %v1693_v34, %v754_v51 }
 0x152   : > { %v744_v47 = vmul.f32 %v1119_v27, %v706_v42  ;;  %v1127_v52 = vpop.eup %1126  ;;  %v776_v53 = vsub.f32 %v745_v43, %v768_v44  ;;  %v721_v54 = vadd.f32 %v1014_v50, %v1000_v48  ;;  %v586_v55 = vpop.f32.mrb[3].mxu1 }
 0x153   : > { %v715_v57 = vpop.f32.mrb[3].mxu0  ;;  %v756_v5 = vmul.f32 %v1127_v52, %v1675_v56  ;;  %v772_v14 = vmul.f32 %v1693_v34, %v757_v62 }
 0x154   : > { %v775_v58 = vsub.f32 %v744_v47, %v767_v31  ;;  %v716_v35 = vadd.f32 %v715_v57, %v586_v55  ;;  %v791_v59 = vadd.f32 %v1702_v46, %v776_v53  ;;  %v747_v60 = vmul.f32 %v1121_v30, %v721_v54  ;;  %v1129_v63 = vpop.eup %1128 }
 0x155   : > { %v1003_v2 = vpop.f32.mrb[4].mxu1  ;;  %v1017_v4 = vpop.f32.mrb[4].mxu0  ;;  %v759_v15 = vmul.f32 %v1129_v63, %v1679_v3  ;;  %v771_v18 = vmul.f32 %v1693_v34, %v756_v5 }
 0x156   : > { %v790_v0 = vadd.f32 %v1702_v46, %v775_v58  ;;  %v746_v1 = vmul.f32 %v1123_v37, %v716_v35  ;;  %v1131_v6 = vpop.eup %1130  ;;  %799 = vst.msk [vmem:[%s1712_s9 + $0x8] sm:$0xff] %vm306_vm0, %v791_v59  ;;  %v778_v8 = vsub.f32 %v747_v60, %v770_v61  ;;  %v731_v9 = vadd.f32 %v1017_v4, %v1003_v2  ;;  %v596_v49 = vpop.f32.mrb[5].mxu1 }
 0x157   : > { %v725_v10 = vpop.f32.mrb[5].mxu0  ;;  %v758_v21 = vmul.f32 %v1131_v6, %v1683_v7  ;;  %v774_v7 = vmul.f32 %v1693_v34, %v759_v15 }
 0x158   : > { %798 = vst.msk [vmem:[%s1712_s9] sm:$0xff] %vm306_vm0, %v790_v0  ;;  %v777_v11 = vsub.f32 %v746_v1, %v769_v39  ;;  %v726_v12 = vadd.f32 %v725_v10, %v596_v49  ;;  %v793_v13 = vadd.f32 %v1702_v46, %v778_v8  ;;  %v749_v56 = vmul.f32 %v1125_v45, %v731_v9 }
 0x159   : > { %v1006_v19 = vpop.f32.mrb[6].mxu1  ;;  %v1020_v20 = vpop.f32.mrb[6].mxu0  ;;  %v773_v33 = vmul.f32 %v1693_v34, %v758_v21 }
 0x15a   : > { %v792_v16 = vadd.f32 %v1702_v46, %v777_v11  ;;  %v748_v17 = vmul.f32 %v1127_v52, %v726_v12  ;;  %801 = vst.msk [vmem:[%s1712_s9 + $0x18] sm:$0xff] %vm306_vm0, %v793_v13  ;;  %v780_v22 = vsub.f32 %v749_v56, %v772_v14  ;;  %v741_v23 = vadd.f32 %v1020_v20, %v1006_v19  ;;  %v606_v24 = vpop.f32.mrb[7].mxu1  ;;  %v735_v25 = vpop.f32.mrb[7].mxu0 }
 0x15b   : > { %v736_v26 = vadd.f32 %v735_v25, %v606_v24 }
 0x15c   : > { %800 = vst.msk [vmem:[%s1712_s9 + $0x10] sm:$0xff] %vm306_vm0, %v792_v16  ;;  %v779_v3 = vsub.f32 %v748_v17, %v771_v18  ;;  %v795_v27 = vadd.f32 %v1702_v46, %v780_v22  ;;  %v751_v28 = vmul.f32 %v1129_v63, %v741_v23 }
 0x15d   : > { %v750_v32 = vmul.f32 %v1131_v6, %v736_v26 }
 0x15e   : > { %v794_v30 = vadd.f32 %v1702_v46, %v779_v3  ;;  %803 = vst.msk [vmem:[%s1712_s9 + $0x28] sm:$0xff] %vm306_vm0, %v795_v27  ;;  %v782_v36 = vsub.f32 %v751_v28, %v774_v7 }
 0x15f   : > { %v781_v37 = vsub.f32 %v750_v32, %v773_v33 }
 0x160   : > { %802 = vst.msk [vmem:[%s1712_s9 + $0x20] sm:$0xff] %vm306_vm0, %v794_v30  ;;  %v797_v38 = vadd.f32 %v1702_v46, %v782_v36 }
 0x161   : > { %v796_v34 = vadd.f32 %v1702_v46, %v781_v37 }
 0x162   : > { %805 = vst.msk [vmem:[%s1712_s9 + $0x38] sm:$0xff] %vm306_vm0, %v797_v38 }
 0x163   : > { %804 = vst.msk [vmem:[%s1712_s9 + $0x30] sm:$0xff] %vm306_vm0, %v796_v34 }
 0x164   : > { %1231 = shalt.err (!%p1228_p9)
}
 0x165   : > { %s1232_s27 = scalar_lea.hbm %s1742_s1, 1024  ;;  %s1236_s10 = scalar_lea.hbm %s1803_s5, 2048 }
 0x166   : > { %p1233_p8 = scmp.ne.s32.totalorder %s1742_s1, %s1232_s27  ;;  %p1237_p7 = scmp.lt.u32.totalorder %s1742_s1, %s1803_s5 }
 0x167   : > { %p1238_p12 = scmp.lt.u32.totalorder %s1236_s10, %s1232_s27  ;;  %p1240_p5 = scmp.lt.u32.totalorder %s1232_s27, %s1742_s1 }
 0x168   : > { %p1234_p13 = pnand %p1233_p8, %p1824_p10 }
 0x169   : > { %p1239_p3 = por %p1238_p12, %p1237_p7 }
 0x16a   : > { %p1235_p4 = pneg %p1234_p13 }
 0x16b   : > { %p1241_p11 = por %p1240_p5, %p1239_p3 }
 0x16d   : > { %p1242_p1 = pnand %p1241_p11, %p1235_p4 }
 0x16f   : > { %1245 = shalt.err (!%p1242_p1)
}
 0x170   : > { %s1312_s14 = smov 128   ;;  %s1313_s12 = smov 8  }
 0x171   : > { %1039 = dma.vmem_to_hbm [thread:$0]  (%p1824_p10), %s1744_s16, 1024, %s1742_s1, %s807_s21, %s1312_s14, %s1312_s14, %s1313_s12  }
 0x172 PF: > { %s837_s24 = sand.u32 1, %s1284_s18   ;;  %p1825_p0 = scmp.ne.s32.totalorder %s1815_s6, 0 }
 0x173   : > { %p1826_p6 = scmp.ge.s32.totalorder %s1304_s23, 2  ;;  %s838_s13 = scalar_lea.sflag [#allocation4], %s837_s24 }
 0x175   : > { %p1053_p2 = pnand %p1826_p6, %p1825_p0 }
 0x177   : > { %1279 = dma.done.wait (!%p1053_p2), %s838_s13, 1024  }
 0x178   : > { %1281 = vsyncadd (!%p1053_p2), %s838_s13, 4294966272  ;;  %s22_s23 = sadd.s32 1, %s1304_s23   ;;  %s1827_s18 = smov %s1288_s19 }
 0x179   : > { %p19_p9 = scmp.ge.s32.totalorder %s22_s23, 4   ;;  %s1828_s19 = smov %s1292_s20 }
 0x17a   : > { %s1829_s20 = smov %s1492_s11  ;;  %s1830_s21 = smov %s1300_s22 }
 0x17b   : > { %s1831_s22 = smov %s1833_s15  ;;  %21 = sbr.rel (!%p19_p9) target bundleno = 9 (0x9), region = 94 }
 0x182   :  { %843 = vsyncpa [#allocation3], 1 }
 0x183   :  { %845 = vsyncpa [#allocation3 + $0x1], 1 }
 0x184   :  { %846 = vsyncpa [#allocation6], 1 }
 0x185   :  { %847 = vsyncpa [#allocation4], 1 }
 0x186   :  { %849 = vsyncpa [#allocation4 + $0x1], 1 }

</bundles_post_ra>
